<compile_context>
chip_gen: v7x
topology: tpu7x:2x2x1
jax: 0.10.0
libtpu: 0.0.40
codegen_flags: <defaults>
</compile_context>

<pallas_src>
import functools

import jax
import jax.numpy as jnp
from jax.experimental import pallas as pl
from jax.experimental.pallas import tpu as pltpu


def _mlp_kernel(x_ref,
                w1_ref, b1_ref,
                w2_ref, b2_ref,
                w3_ref, b3_ref,
                w4_ref, b4_ref,
                w5_ref, b5_ref,
                o_ref):
    """Fused (W @ X + b, ReLU) x5.  Batch on lanes; bf16 MXU, f32 accumulate."""
    h = x_ref[...]                                                   # (8, T) f32

    h = jnp.dot(w1_ref[...], h.astype(jnp.bfloat16),
                preferred_element_type=jnp.float32) + b1_ref[...]    # (32, T)
    h = jnp.maximum(h, 0.0)

    h = jnp.dot(w2_ref[...], h.astype(jnp.bfloat16),
                preferred_element_type=jnp.float32) + b2_ref[...]    # (64, T)
    h = jnp.maximum(h, 0.0)

    h = jnp.dot(w3_ref[...], h.astype(jnp.bfloat16),
                preferred_element_type=jnp.float32) + b3_ref[...]    # (64, T)
    h = jnp.maximum(h, 0.0)

    h = jnp.dot(w4_ref[...], h.astype(jnp.bfloat16),
                preferred_element_type=jnp.float32) + b4_ref[...]    # (32, T)
    h = jnp.maximum(h, 0.0)

    o_ref[...] = (jnp.dot(w5_ref[...], h.astype(jnp.bfloat16),
                          preferred_element_type=jnp.float32)
                  + b5_ref[...])                                     # (8, T)


def _round_up(n, m):
    return ((n + m - 1) // m) * m


def _cdiv(a, b):
    return -(-a // b)


def preprocess_params(params):
    """One-time weight prep: pad in 6->8 and out 3->8, W->bf16, b->(o,1) f32."""
    in_f = params[0][0].shape[1]
    out_f = params[-1][0].shape[0]
    in_pad = _round_up(in_f, 8)      # 6 -> 8 (sublane multiple, exact zero-pad)
    out_pad = _round_up(out_f, 8)    # 3 -> 8 (full-vreg unmasked output store)

    flat = []
    n = len(params)
    for li, (w, b) in enumerate(params):
        w = jnp.asarray(w, jnp.float32)
        b = jnp.asarray(b, jnp.float32)
        o, i = w.shape
        if li == 0 and i < in_pad:
            w = jnp.pad(w, ((0, 0), (0, in_pad - i)))       # zero cols: exact
        if li == n - 1 and o < out_pad:
            w = jnp.pad(w, ((0, out_pad - o), (0, 0)))      # zero rows: exact
            b = jnp.pad(b, (0, out_pad - o))
            o = out_pad
        flat.append(w.astype(jnp.bfloat16))                 # bf16 MXU operand
        flat.append(b.reshape(o, 1))                        # f32 bias column
    return tuple(flat), in_f, in_pad, out_f, out_pad


def make_mlp_forward(params, tile_b=4096):
    """Returns a jitted forward: x (B, 6) f32 -> (B, 3) f32."""
    flat, in_f, in_pad, out_f, out_pad = preprocess_params(params)

    # Weights/biases stay resident across grid steps (constant index_map).
    param_specs = [pl.BlockSpec(a.shape, lambda i: (0, 0)) for a in flat]

    flops_per_sample = 2 * (6 * 32 + 32 * 64 + 64 * 64 + 64 * 32 + 32 * 3)
    param_bytes = sum(int(a.size) * a.dtype.itemsize for a in flat)

    @jax.jit
    def forward(x):
        B = x.shape[0]
        b128 = _round_up(max(B, 1), 128)

        # Choose number of grid steps: amortize per-step overhead with big
        # tiles, keep padding waste <128 cols/step, and use >=2 steps when
        # the batch is large enough so v7x megacore gets both TensorCores.
        num_steps = max(1, _cdiv(b128, tile_b))
        if num_steps == 1 and b128 >= 1024:
            num_steps = 2
        tile = _round_up(_cdiv(b128, num_steps), 128)
        b_pad = tile * num_steps

        # Batch-on-lanes input slab (no materialized zero array; pad fuses).
        xt = jnp.pad(x.astype(jnp.float32).T,
                     ((0, in_pad - in_f), (0, b_pad - B)))

        bytes_accessed = (in_pad * b_pad * 4 + out_pad * b_pad * 4
                          + param_bytes)

        out = pl.pallas_call(
            _mlp_kernel,
            out_shape=jax.ShapeDtypeStruct((out_pad, b_pad), jnp.float32),
            grid=(num_steps,),
            in_specs=[pl.BlockSpec((in_pad, tile), lambda i: (0, i))]
                     + param_specs,
            out_specs=pl.BlockSpec((out_pad, tile), lambda i: (0, i)),
            compiler_params=pltpu.CompilerParams(
                dimension_semantics=("parallel",),
                vmem_limit_bytes=32 * 1024 * 1024),
            cost_estimate=pl.CostEstimate(
                flops=flops_per_sample * b_pad,
                transcendentals=0,
                bytes_accessed=bytes_accessed),
        )(xt, *flat)

        # Drop feature/batch padding; return (B, 3) like the PyTorch module.
        return out[:out_f, :B].T

    return forward


def init_params(key):
    """PyTorch-style init: W (out,in), b (out,), U(-1/sqrt(fan_in), +)."""
    dims = [(6, 32), (32, 64), (64, 64), (64, 32), (32, 3)]
    params = []
    for (fan_in, fan_out) in dims:
        key, kw, kb = jax.random.split(key, 3)
        bound = 1.0 / jnp.sqrt(fan_in)
        w = jax.random.uniform(kw, (fan_out, fan_in), jnp.float32, -bound, bound)
        b = jax.random.uniform(kb, (fan_out,), jnp.float32, -bound, bound)
        params.append((w, b))
    return params


def reference_forward(x, params, bf16_matmul=False):
    h = x.astype(jnp.float32)
    for i, (w, b) in enumerate(params):
        if bf16_matmul:
            h = jnp.dot(h.astype(jnp.bfloat16), w.astype(jnp.bfloat16).T,
                        preferred_element_type=jnp.float32) + b
        else:
            h = h @ w.T + b
        if i < len(params) - 1:
            h = jnp.maximum(h, 0.0)
    return h


if __name__ == "__main__":
    key = jax.random.PRNGKey(0)
    k_x, k_p, k_x2 = jax.random.split(key, 3)

    params = init_params(k_p)
    fwd = make_mlp_forward(params)

    # Small test, single grid step.
    B = 8
    x = jax.random.normal(k_x, (B, 6), jnp.float32)
    out = jax.block_until_ready(fwd(x))
    assert out.shape == (B, 3)
    ref_bf16 = reference_forward(x, params, bf16_matmul=True)
    ref_f32 = reference_forward(x, params, bf16_matmul=False)
    assert jnp.allclose(out, ref_bf16, atol=2e-3, rtol=2e-3), (
        float(jnp.max(jnp.abs(out - ref_bf16))))
    assert jnp.allclose(out, ref_f32, atol=5e-2, rtol=5e-2), (
        float(jnp.max(jnp.abs(out - ref_f32))))

    # Non-multiple-of-128 batch, multi-step parallel grid + padding path.
    B2 = 1300
    x2 = jax.random.normal(k_x2, (B2, 6), jnp.float32)
    out2 = jax.block_until_ready(fwd(x2))
    assert out2.shape == (B2, 3)
    ref2 = reference_forward(x2, params, bf16_matmul=True)
    assert jnp.allclose(out2, ref2, atol=2e-3, rtol=2e-3), (
        float(jnp.max(jnp.abs(out2 - ref2))))

    print("KERNEL_OK")
</pallas_src>

<mosaic_0001>
module attributes {stable_mosaic.version = 11 : i64} {
  func.func @_mlp_kernel(%arg0: i32, %arg1: memref<8x128xf32, #tpu.memory_space<vmem>>, %arg2: memref<32x8xbf16, #tpu.memory_space<vmem>>, %arg3: memref<32x1xf32, #tpu.memory_space<vmem>>, %arg4: memref<64x32xbf16, #tpu.memory_space<vmem>>, %arg5: memref<64x1xf32, #tpu.memory_space<vmem>>, %arg6: memref<64x64xbf16, #tpu.memory_space<vmem>>, %arg7: memref<64x1xf32, #tpu.memory_space<vmem>>, %arg8: memref<32x64xbf16, #tpu.memory_space<vmem>>, %arg9: memref<32x1xf32, #tpu.memory_space<vmem>>, %arg10: memref<8x32xbf16, #tpu.memory_space<vmem>>, %arg11: memref<8x1xf32, #tpu.memory_space<vmem>>, %arg12: memref<8x128xf32, #tpu.memory_space<vmem>>) attributes {dimension_semantics = [#tpu.dimension_semantics<parallel>], iteration_bounds = array<i64: 1>, scalar_prefetch = 0 : i64, scratch_operands = 0 : i64, tpu.core_type = #tpu.core_type<tc>, window_params = [{transform_indices = @transform_0, window_bounds = array<i64: 8, 128>}, {pipeline_mode = #tpu.pipeline_mode<synchronous>, transform_indices = @transform_1, window_bounds = array<i64: 32, 8>}, {pipeline_mode = #tpu.pipeline_mode<synchronous>, transform_indices = @transform_2, window_bounds = array<i64: 32, 1>}, {pipeline_mode = #tpu.pipeline_mode<synchronous>, transform_indices = @transform_3, window_bounds = array<i64: 64, 32>}, {pipeline_mode = #tpu.pipeline_mode<synchronous>, transform_indices = @transform_4, window_bounds = array<i64: 64, 1>}, {pipeline_mode = #tpu.pipeline_mode<synchronous>, transform_indices = @transform_5, window_bounds = array<i64: 64, 64>}, {pipeline_mode = #tpu.pipeline_mode<synchronous>, transform_indices = @transform_6, window_bounds = array<i64: 64, 1>}, {pipeline_mode = #tpu.pipeline_mode<synchronous>, transform_indices = @transform_7, window_bounds = array<i64: 32, 64>}, {pipeline_mode = #tpu.pipeline_mode<synchronous>, transform_indices = @transform_8, window_bounds = array<i64: 32, 1>}, {pipeline_mode = #tpu.pipeline_mode<synchronous>, transform_indices = @transform_9, window_bounds = array<i64: 8, 32>}, {pipeline_mode = #tpu.pipeline_mode<synchronous>, transform_indices = @transform_10, window_bounds = array<i64: 8, 1>}, {transform_indices = @transform_11, window_bounds = array<i64: 8, 128>}]} {
    %c0 = arith.constant 0 : index
    %c0_0 = arith.constant 0 : index
    %0 = vector.load %arg1[%c0, %c0_0] : memref<8x128xf32, #tpu.memory_space<vmem>>, vector<8x128xf32>
    %c0_1 = arith.constant 0 : index
    %c0_2 = arith.constant 0 : index
    %1 = vector.load %arg2[%c0_1, %c0_2] : memref<32x8xbf16, #tpu.memory_space<vmem>>, vector<32x8xbf16>
    %2 = arith.truncf %0 : vector<8x128xf32> to vector<8x128xbf16>
    %cst = arith.constant dense<0.000000e+00> : vector<32x128xf32>
    %3 = tpu.matmul %1, %2, %cst {dimension_numbers = #tpu.dot_dimension_numbers<[1], [0], [0], [1], [0, 0, 1, 1], [], []>} : vector<32x8xbf16>, vector<8x128xbf16>, vector<32x128xf32> -> vector<32x128xf32>
    %c0_3 = arith.constant 0 : index
    %c0_4 = arith.constant 0 : index
    %4 = vector.load %arg3[%c0_3, %c0_4] : memref<32x1xf32, #tpu.memory_space<vmem>>, vector<32x1xf32>
    %5 = vector.broadcast %4 : vector<32x1xf32> to vector<32x128xf32>
    %6 = arith.addf %3, %5 : vector<32x128xf32>
    %cst_5 = arith.constant 0.000000e+00 : f32
    %7 = vector.broadcast %cst_5 : f32 to vector<32x128xf32>
    %8 = arith.maximumf %6, %7 : vector<32x128xf32>
    %c0_6 = arith.constant 0 : index
    %c0_7 = arith.constant 0 : index
    %9 = vector.load %arg4[%c0_6, %c0_7] : memref<64x32xbf16, #tpu.memory_space<vmem>>, vector<64x32xbf16>
    %10 = arith.truncf %8 : vector<32x128xf32> to vector<32x128xbf16>
    %cst_8 = arith.constant dense<0.000000e+00> : vector<64x128xf32>
    %11 = tpu.matmul %9, %10, %cst_8 {dimension_numbers = #tpu.dot_dimension_numbers<[1], [0], [0], [1], [0, 0, 1, 1], [], []>} : vector<64x32xbf16>, vector<32x128xbf16>, vector<64x128xf32> -> vector<64x128xf32>
    %c0_9 = arith.constant 0 : index
    %c0_10 = arith.constant 0 : index
    %12 = vector.load %arg5[%c0_9, %c0_10] : memref<64x1xf32, #tpu.memory_space<vmem>>, vector<64x1xf32>
    %13 = vector.broadcast %12 : vector<64x1xf32> to vector<64x128xf32>
    %14 = arith.addf %11, %13 : vector<64x128xf32>
    %cst_11 = arith.constant 0.000000e+00 : f32
    %15 = vector.broadcast %cst_11 : f32 to vector<64x128xf32>
    %16 = arith.maximumf %14, %15 : vector<64x128xf32>
    %c0_12 = arith.constant 0 : index
    %c0_13 = arith.constant 0 : index
    %17 = vector.load %arg6[%c0_12, %c0_13] : memref<64x64xbf16, #tpu.memory_space<vmem>>, vector<64x64xbf16>
    %18 = arith.truncf %16 : vector<64x128xf32> to vector<64x128xbf16>
    %cst_14 = arith.constant dense<0.000000e+00> : vector<64x128xf32>
    %19 = tpu.matmul %17, %18, %cst_14 {dimension_numbers = #tpu.dot_dimension_numbers<[1], [0], [0], [1], [0, 0, 1, 1], [], []>} : vector<64x64xbf16>, vector<64x128xbf16>, vector<64x128xf32> -> vector<64x128xf32>
    %c0_15 = arith.constant 0 : index
    %c0_16 = arith.constant 0 : index
    %20 = vector.load %arg7[%c0_15, %c0_16] : memref<64x1xf32, #tpu.memory_space<vmem>>, vector<64x1xf32>
    %21 = vector.broadcast %20 : vector<64x1xf32> to vector<64x128xf32>
    %22 = arith.addf %19, %21 : vector<64x128xf32>
    %cst_17 = arith.constant 0.000000e+00 : f32
    %23 = vector.broadcast %cst_17 : f32 to vector<64x128xf32>
    %24 = arith.maximumf %22, %23 : vector<64x128xf32>
    %c0_18 = arith.constant 0 : index
    %c0_19 = arith.constant 0 : index
    %25 = vector.load %arg8[%c0_18, %c0_19] : memref<32x64xbf16, #tpu.memory_space<vmem>>, vector<32x64xbf16>
    %26 = arith.truncf %24 : vector<64x128xf32> to vector<64x128xbf16>
    %cst_20 = arith.constant dense<0.000000e+00> : vector<32x128xf32>
    %27 = tpu.matmul %25, %26, %cst_20 {dimension_numbers = #tpu.dot_dimension_numbers<[1], [0], [0], [1], [0, 0, 1, 1], [], []>} : vector<32x64xbf16>, vector<64x128xbf16>, vector<32x128xf32> -> vector<32x128xf32>
    %c0_21 = arith.constant 0 : index
    %c0_22 = arith.constant 0 : index
    %28 = vector.load %arg9[%c0_21, %c0_22] : memref<32x1xf32, #tpu.memory_space<vmem>>, vector<32x1xf32>
    %29 = vector.broadcast %28 : vector<32x1xf32> to vector<32x128xf32>
    %30 = arith.addf %27, %29 : vector<32x128xf32>
    %cst_23 = arith.constant 0.000000e+00 : f32
    %31 = vector.broadcast %cst_23 : f32 to vector<32x128xf32>
    %32 = arith.maximumf %30, %31 : vector<32x128xf32>
    %c0_24 = arith.constant 0 : index
    %c0_25 = arith.constant 0 : index
    %33 = vector.load %arg10[%c0_24, %c0_25] : memref<8x32xbf16, #tpu.memory_space<vmem>>, vector<8x32xbf16>
    %34 = arith.truncf %32 : vector<32x128xf32> to vector<32x128xbf16>
    %cst_26 = arith.constant dense<0.000000e+00> : vector<8x128xf32>
    %35 = tpu.matmul %33, %34, %cst_26 {dimension_numbers = #tpu.dot_dimension_numbers<[1], [0], [0], [1], [0, 0, 1, 1], [], []>} : vector<8x32xbf16>, vector<32x128xbf16>, vector<8x128xf32> -> vector<8x128xf32>
    %c0_27 = arith.constant 0 : index
    %c0_28 = arith.constant 0 : index
    %36 = vector.load %arg11[%c0_27, %c0_28] : memref<8x1xf32, #tpu.memory_space<vmem>>, vector<8x1xf32>
    %37 = vector.broadcast %36 : vector<8x1xf32> to vector<8x128xf32>
    %38 = arith.addf %35, %37 : vector<8x128xf32>
    %c0_29 = arith.constant 0 : index
    %c0_30 = arith.constant 0 : index
    %39 = vector.load %arg12[%c0_29, %c0_30] : memref<8x128xf32, #tpu.memory_space<vmem>>, vector<8x128xf32>
    tpu.vector_store %arg12[%c0_29, %c0_30], %38 {strides = array<i32>} : memref<8x128xf32, #tpu.memory_space<vmem>>, vector<8x128xf32>,
    return
  }
  func.func @transform_0(%arg0: i32) -> (i32, i32) {
    %c0_i32 = arith.constant 0 : i32
    %c0_i32_0 = arith.constant 0 : i32
    return %c0_i32, %arg0 : i32, i32
  }
  func.func @transform_1(%arg0: i32) -> (i32, i32) {
    %c0_i32 = arith.constant 0 : i32
    %c0_i32_0 = arith.constant 0 : i32
    %c0_i32_1 = arith.constant 0 : i32
    return %c0_i32, %c0_i32_0 : i32, i32
  }
  func.func @transform_2(%arg0: i32) -> (i32, i32) {
    %c0_i32 = arith.constant 0 : i32
    %c0_i32_0 = arith.constant 0 : i32
    %c0_i32_1 = arith.constant 0 : i32
    return %c0_i32, %c0_i32_0 : i32, i32
  }
  func.func @transform_3(%arg0: i32) -> (i32, i32) {
    %c0_i32 = arith.constant 0 : i32
    %c0_i32_0 = arith.constant 0 : i32
    %c0_i32_1 = arith.constant 0 : i32
    return %c0_i32, %c0_i32_0 : i32, i32
  }
  func.func @transform_4(%arg0: i32) -> (i32, i32) {
    %c0_i32 = arith.constant 0 : i32
    %c0_i32_0 = arith.constant 0 : i32
    %c0_i32_1 = arith.constant 0 : i32
    return %c0_i32, %c0_i32_0 : i32, i32
  }
  func.func @transform_5(%arg0: i32) -> (i32, i32) {
    %c0_i32 = arith.constant 0 : i32
    %c0_i32_0 = arith.constant 0 : i32
    %c0_i32_1 = arith.constant 0 : i32
    return %c0_i32, %c0_i32_0 : i32, i32
  }
  func.func @transform_6(%arg0: i32) -> (i32, i32) {
    %c0_i32 = arith.constant 0 : i32
    %c0_i32_0 = arith.constant 0 : i32
    %c0_i32_1 = arith.constant 0 : i32
    return %c0_i32, %c0_i32_0 : i32, i32
  }
  func.func @transform_7(%arg0: i32) -> (i32, i32) {
    %c0_i32 = arith.constant 0 : i32
    %c0_i32_0 = arith.constant 0 : i32
    %c0_i32_1 = arith.constant 0 : i32
    return %c0_i32, %c0_i32_0 : i32, i32
  }
  func.func @transform_8(%arg0: i32) -> (i32, i32) {
    %c0_i32 = arith.constant 0 : i32
    %c0_i32_0 = arith.constant 0 : i32
    %c0_i32_1 = arith.constant 0 : i32
    return %c0_i32, %c0_i32_0 : i32, i32
  }
  func.func @transform_9(%arg0: i32) -> (i32, i32) {
    %c0_i32 = arith.constant 0 : i32
    %c0_i32_0 = arith.constant 0 : i32
    %c0_i32_1 = arith.constant 0 : i32
    return %c0_i32, %c0_i32_0 : i32, i32
  }
  func.func @transform_10(%arg0: i32) -> (i32, i32) {
    %c0_i32 = arith.constant 0 : i32
    %c0_i32_0 = arith.constant 0 : i32
    %c0_i32_1 = arith.constant 0 : i32
    return %c0_i32, %c0_i32_0 : i32, i32
  }
  func.func @transform_11(%arg0: i32) -> (i32, i32) {
    %c0_i32 = arith.constant 0 : i32
    %c0_i32_0 = arith.constant 0 : i32
    return %c0_i32, %arg0 : i32, i32
  }
}

</mosaic_0001>

<bundles_post_ra>
// kernel: forward.1
= control target key start
LH: loop header
LB: loop body
LE: loop exit
PB: predicated region body
PF: predicated region fallthrough
CT: control target
= control target key end

     0   :  { %16 = vsyncpa [#allocation3], 0  ;;  %s1246_s0 = inlined_call_operand.vmem [shape: f32[8,128], index: 0, kind: input, shape index: {}]   ;;  %s1247_s1 = inlined_call_operand.hbm [shape: bf16[32,8], index: 1, kind: input, shape index: {}]   ;;  %s1248_s2 = inlined_call_operand.hbm [shape: f32[32,1], index: 2, kind: input, shape index: {}]   ;;  %s1249_s3 = inlined_call_operand.vmem [shape: bf16[64,32], index: 3, kind: input, shape index: {}]   ;;  %s1250_s4 = inlined_call_operand.hbm [shape: f32[64,1], index: 4, kind: input, shape index: {}]   ;;  %s1251_s5 = inlined_call_operand.vmem [shape: bf16[64,64], index: 5, kind: input, shape index: {}]   ;;  %s1252_s6 = inlined_call_operand.hbm [shape: f32[64,1], index: 6, kind: input, shape index: {}]   ;;  %s1253_s7 = inlined_call_operand.vmem [shape: bf16[32,64], index: 7, kind: input, shape index: {}]   ;;  %s1254_s8 = inlined_call_operand.hbm [shape: f32[32,1], index: 8, kind: input, shape index: {}]   ;;  %s1255_s9 = inlined_call_operand.hbm [shape: bf16[8,32], index: 9, kind: input, shape index: {}]   ;;  %s1256_s10 = inlined_call_operand.hbm [shape: f32[8,1], index: 10, kind: input, shape index: {}]   ;;  %s1257_s11 = inlined_call_operand.vmem [shape: f32[8,128], index: 11, kind: output, shape index: {}]  }
   0x1   :  { %17 = vsyncpa [#allocation5], 0 }
   0x2   :  { %18 = vsyncpa [#allocation8], 0 }
   0x3   :  { %19 = vsyncpa [#allocation11], 0  ;;  %s1022_s17 = smov [#allocation4]   ;;  %s860_s21 = scalar_lea.hbm %s1248_s2, 512 }
   0x4   :  { %s39_s18 = sshll.u32 %s1022_s17, 4  ;;  %p861_p0 = scmp.ne.s32.totalorder %s1248_s2, %s860_s21  ;;  %s40_s18 = int_to_ptr.vmem [resolvable:$true] %s39_s18 }
   0x5   :  { %p864_p1 = scmp.lt.u32.totalorder %s860_s21, %s1248_s2 }
   0x7   :  { %p866_p2 = pnand %p864_p1, %p861_p0 }
   0x9   :  { %869 = shalt.err (!%p866_p2)
}
   0xa   :  { %s870_s26 = scalar_lea.vmem %s40_s18, 512  ;;  %p875_p4 = scmp.lt.s32.totalorder %s40_s18, %s40_s18 }
   0xb   :  { %p871_p3 = scmp.ne.s32.totalorder %s40_s18, %s870_s26  ;;  %p876_p5 = scmp.lt.s32.totalorder %s870_s26, %s870_s26 }
   0xd   :  { %p877_p6 = por %p876_p5, %p875_p4 }
   0xf   :  { %p878_p7 = pnand %p877_p6, %p871_p3 }
  0x11   :  { %881 = shalt.err (!%p878_p7)
}
  0x12   :  { %s1023_s27 = smov 128   ;;  %s1024_s28 = smov 8  }
  0x13   :  { %45 = dma.hbm_to_vmem [thread:$0]  %s1248_s2, 512, %s40_s18, [#allocation5], %s1023_s27, %s1023_s27, %s1024_s28  }
  0x14   :  { %s1025_s12 = smov [#allocation7]   ;;  %s1026_s14 = smov [#allocation10]  }
  0x15   :  { %s67_s13 = sshll.u32 %s1025_s12, 4  ;;  %s94_s15 = sshll.u32 %s1026_s14, 4  ;;  %s68_s13 = int_to_ptr.vmem [resolvable:$true] %s67_s13  ;;  %s95_s15 = int_to_ptr.vmem [resolvable:$true] %s94_s15 }
  0x16   :  { %s882_s19 = scalar_lea.hbm %s1252_s6, 1024 }
  0x17   :  { %p883_p8 = scmp.ne.s32.totalorder %s1252_s6, %s882_s19  ;;  %p886_p9 = scmp.lt.u32.totalorder %s882_s19, %s1252_s6 }
  0x19   :  { %p888_p10 = pnand %p886_p9, %p883_p8 }
  0x1b   :  { %891 = shalt.err (!%p888_p10)
}
  0x1c   :  { %s892_s2 = scalar_lea.vmem %s68_s13, 1024  ;;  %p897_p12 = scmp.lt.s32.totalorder %s68_s13, %s68_s13 }
  0x1d   :  { %p893_p11 = scmp.ne.s32.totalorder %s68_s13, %s892_s2  ;;  %p898_p13 = scmp.lt.s32.totalorder %s892_s2, %s892_s2 }
  0x1f   :  { %p899_p0 = por %p898_p13, %p897_p12 }
  0x21   :  { %p900_p1 = pnand %p899_p0, %p893_p11 }
  0x23   :  { %903 = shalt.err (!%p900_p1)
}
  0x24   :  { %73 = dma.hbm_to_vmem [thread:$0]  %s1252_s6, 1024, %s68_s13, [#allocation8], %s1023_s27, %s1023_s27, %s1024_s28  }
  0x25   :  { %s904_s29 = scalar_lea.hbm %s1255_s9, 64 }
  0x26   :  { %p905_p2 = scmp.ne.s32.totalorder %s1255_s9, %s904_s29  ;;  %p908_p3 = scmp.lt.u32.totalorder %s904_s29, %s1255_s9 }
  0x28   :  { %p910_p4 = pnand %p908_p3, %p905_p2 }
  0x2a   :  { %913 = shalt.err (!%p910_p4)
}
  0x2b   :  { %s914_s17 = scalar_lea.vmem %s95_s15, 64  ;;  %p919_p6 = scmp.lt.s32.totalorder %s95_s15, %s95_s15 }
  0x2c   :  { %p915_p5 = scmp.ne.s32.totalorder %s95_s15, %s914_s17  ;;  %p920_p7 = scmp.lt.s32.totalorder %s914_s17, %s914_s17 }
  0x2e   :  { %p921_p8 = por %p920_p7, %p919_p6 }
  0x30   :  { %p922_p9 = pnand %p921_p8, %p915_p5 }
  0x32   :  { %925 = shalt.err (!%p922_p9)
}
  0x33   :  { %97 = dma.hbm_to_vmem [thread:$0]  %s1255_s9, 64, %s95_s15, [#allocation11]  }
  0x34   :  { %s1027_s19 = smov [#allocation2]   ;;  %s926_s23 = scalar_lea.hbm %s1247_s1, 256 }
  0x35   :  { %s27_s20 = sshll.u32 %s1027_s19, 4  ;;  %p927_p10 = scmp.ne.s32.totalorder %s1247_s1, %s926_s23  ;;  %s28_s20 = int_to_ptr.vmem [resolvable:$true] %s27_s20 }
  0x36   :  { %p930_p11 = scmp.lt.u32.totalorder %s926_s23, %s1247_s1 }
  0x38   :  { %p932_p12 = pnand %p930_p11, %p927_p10 }
  0x3a   :  { %935 = shalt.err (!%p932_p12)
}
  0x3b   :  { %s936_s26 = scalar_lea.vmem %s28_s20, 256  ;;  %p941_p0 = scmp.lt.s32.totalorder %s28_s20, %s28_s20 }
  0x3c   :  { %p937_p13 = scmp.ne.s32.totalorder %s28_s20, %s936_s26  ;;  %p942_p1 = scmp.lt.s32.totalorder %s936_s26, %s936_s26 }
  0x3e   :  { %p943_p2 = por %p942_p1, %p941_p0 }
  0x40   :  { %p944_p3 = pnand %p943_p2, %p937_p13 }
  0x42   :  { %947 = shalt.err (!%p944_p3)
}
  0x43   :  { %s1028_s9 = smov 64   ;;  %s1029_s15 = smov 4  }
  0x44   :  { %33 = dma.hbm_to_vmem [thread:$0]  %s1247_s1, 256, %s28_s20, [#allocation3], %s1028_s9, %s1028_s9, %s1029_s15  }
  0x45   :  { %s1030_s12 = smov [#allocation6]   ;;  %s1031_s16 = smov [#allocation9]  }
  0x46   :  { %s53_s14 = sshll.u32 %s1030_s12, 4  ;;  %s81_s17 = sshll.u32 %s1031_s16, 4  ;;  %s54_s14 = int_to_ptr.vmem [resolvable:$true] %s53_s14  ;;  %s1150_s17 = int_to_ptr.vmem [resolvable:$true] %s81_s17 }
  0x47   :  { %s948_s19 = scalar_lea.hbm %s1250_s4, 1024 }
  0x48   :  { %p949_p4 = scmp.ne.s32.totalorder %s1250_s4, %s948_s19  ;;  %p952_p5 = scmp.lt.u32.totalorder %s948_s19, %s1250_s4 }
  0x4a   :  { %p954_p6 = pnand %p952_p5, %p949_p4 }
  0x4c   :  { %957 = shalt.err (!%p954_p6)
}
  0x4d   :  { %s958_s1 = scalar_lea.vmem %s54_s14, 1024  ;;  %p963_p8 = scmp.lt.s32.totalorder %s54_s14, %s54_s14 }
  0x4e   :  { %p959_p7 = scmp.ne.s32.totalorder %s54_s14, %s958_s1  ;;  %p964_p9 = scmp.lt.s32.totalorder %s958_s1, %s958_s1 }
  0x50   :  { %p965_p10 = por %p964_p9, %p963_p8 }
  0x52   :  { %p966_p11 = pnand %p965_p10, %p959_p7 }
  0x54   :  { %969 = shalt.err (!%p966_p11)
}
  0x55   :  { %59 = dma.hbm_to_vmem [thread:$0]  %s1250_s4, 1024, %s54_s14, [#allocation5], %s1023_s27, %s1023_s27, %s1024_s28  }
  0x56   :  { %s970_s26 = scalar_lea.hbm %s1254_s8, 512 }
  0x57   :  { %p971_p12 = scmp.ne.s32.totalorder %s1254_s8, %s970_s26  ;;  %p974_p13 = scmp.lt.u32.totalorder %s970_s26, %s1254_s8 }
  0x59   :  { %p976_p0 = pnand %p974_p13, %p971_p12 }
  0x5b   :  { %979 = shalt.err (!%p976_p0)
}
  0x5c   :  { %s980_s12 = scalar_lea.vmem %s1150_s17, 512  ;;  %p985_p2 = scmp.lt.s32.totalorder %s1150_s17, %s1150_s17 }
  0x5d   :  { %p981_p1 = scmp.ne.s32.totalorder %s1150_s17, %s980_s12  ;;  %p986_p3 = scmp.lt.s32.totalorder %s980_s12, %s980_s12 }
  0x5f   :  { %p987_p4 = por %p986_p3, %p985_p2 }
  0x61   :  { %p988_p5 = pnand %p987_p4, %p981_p1 }
  0x63   :  { %991 = shalt.err (!%p988_p5)
}
  0x64   :  { %87 = dma.hbm_to_vmem [thread:$0]  %s1254_s8, 512, %s1150_s17, [#allocation8], %s1023_s27, %s1023_s27, %s1024_s28  }
  0x65   :  { %s1032_s16 = smov [#allocation12]   ;;  %s992_s21 = scalar_lea.hbm %s1256_s10, 128 }
  0x66   :  { %s104_s6 = sshll.u32 %s1032_s16, 4  ;;  %p993_p6 = scmp.ne.s32.totalorder %s1256_s10, %s992_s21  ;;  %s105_s6 = int_to_ptr.vmem [resolvable:$true] %s104_s6 }
  0x67   :  { %p996_p7 = scmp.lt.u32.totalorder %s992_s21, %s1256_s10 }
  0x69   :  { %p998_p8 = pnand %p996_p7, %p993_p6 }
  0x6b   :  { %1001 = shalt.err (!%p998_p8)
}
  0x6c   :  { %s1002_s20 = scalar_lea.vmem %s105_s6, 128  ;;  %p1007_p10 = scmp.lt.s32.totalorder %s105_s6, %s105_s6 }
  0x6d   :  { %p1003_p9 = scmp.ne.s32.totalorder %s105_s6, %s1002_s20  ;;  %p1008_p11 = scmp.lt.s32.totalorder %s1002_s20, %s1002_s20 }
  0x6f   :  { %p1009_p12 = por %p1008_p11, %p1007_p10 }
  0x71   :  { %p1010_p13 = pnand %p1009_p12, %p1003_p9 }
  0x73   :  { %1013 = shalt.err (!%p1010_p13)
}
  0x74   :  { %107 = dma.hbm_to_vmem [thread:$0]  %s1256_s10, 128, %s105_s6, [#allocation11]  }
  0x75   :  { %1014 = dma.done.wait [#allocation3], 256  }
  0x76   :  { %1015 = vsyncadd [#allocation3], 4294967040 }
  0x77   :  { %1016 = dma.done.wait [#allocation5], 1536  }
  0x78   :  { %1017 = vsyncadd [#allocation5], 4294965760 }
  0x79   :  { %1018 = dma.done.wait [#allocation8], 1536  }
  0x7a   :  { %1019 = vsyncadd [#allocation8], 4294965760 }
  0x7b   :  { %1020 = dma.done.wait [#allocation11], 192  }
  0x7c   :  { %1021 = vsyncadd [#allocation11], 4294967104  ;;  %v1033_v0 = vmov 0   ;;  %vm177_vm0 = vcmask 1043456   ;;  %v130_v1 = vld [vmem:[%s1246_s0] sm:$0xff]  ;;  %vm170_vm1 = vcmask 64512  }
  0x7d   :  { %846 = vset.pattern.permute.xlu0 %v1033_v0  ;;  %847 = vset.pattern.permute.xlu1 %v1033_v0  ;;  %v135_v2 = vpack.c.bf16 %v130_v1, %v130_v1  ;;  %v848_v3 = vld [vmem:[#allocation2] sm:$0xff]   ;;  %v136_v4 = vld [vmem:[#allocation4] sm:$0xff]  ;;  %v849_v6 = vld [vmem:[#allocation2 + $0x8] sm:$0xff]   ;;  %vm312_vm2 = vcmask 261120   ;;  %vm478_vm3 = vcmask 523264   ;;  %vm1035_vm4 = vmmov 0  }
  0x7e   :  { %779 = vmatprep.mubr.msk.bf16.mxu0 %vm170_vm1, %v848_v3  ;;  %v138_v7 = vld [vmem:[#allocation4 + $0x10] sm:$0xff]  ;;  %142 = vperm.xlu0 %846, %v136_v4   ;;  %v137_v8 = vld [vmem:[#allocation4 + $0x8] sm:$0xff]  ;;  %v139_v9 = vld [vmem:[#allocation4 + $0x18] sm:$0xff] }
  0x7f   :  { %831 = vmatprep.subr.msk.bf16.mxu0 %vm177_vm0, %v135_v2  ;;  %v179_v5 = vsel %vm177_vm0, %v135_v2, 0  ;;  %152 = vperm.xlu1 %847, %v138_v7   ;;  %v244_v10 = vld [vmem:[#allocation6] sm:$0xff]  ;;  %v245_v11 = vld [vmem:[#allocation6 + $0x8] sm:$0xff]  ;;  %v246_v12 = vld [vmem:[#allocation6 + $0x10] sm:$0xff] }
  0x80   :  { %778 = vmatpush3.bf16.msra.mxu0 %v179_v5  ;;  %v247_v13 = vld [vmem:[#allocation6 + $0x18] sm:$0xff]  ;;  %v248_v14 = vld [vmem:[#allocation6 + $0x20] sm:$0xff]  ;;  %v249_v15 = vld [vmem:[#allocation6 + $0x28] sm:$0xff] }
  0x81   :  { %v250_v16 = vld [vmem:[#allocation6 + $0x30] sm:$0xff]  ;;  %v251_v17 = vld [vmem:[#allocation6 + $0x38] sm:$0xff]  ;;  %v410_v18 = vld [vmem:[#allocation7] sm:$0xff] }
  0x82   :  { %147 = vperm.xlu0 %846, %v137_v8   ;;  %v411_v19 = vld [vmem:[#allocation7 + $0x8] sm:$0xff]  ;;  %v412_v20 = vld [vmem:[#allocation7 + $0x10] sm:$0xff]  ;;  %v413_v21 = vld [vmem:[#allocation7 + $0x18] sm:$0xff] }
  0x83   :  { %780 = vmatmul.mubr.msk.bf16.vlgmr.msra.gmra.mrb[0].mxu0 %vm170_vm1, %v849_v6  ;;  %157 = vperm.xlu1 %847, %v139_v9   ;;  %v414_v22 = vld [vmem:[#allocation7 + $0x20] sm:$0xff]  ;;  %v415_v23 = vld [vmem:[#allocation7 + $0x28] sm:$0xff]  ;;  %v416_v24 = vld [vmem:[#allocation7 + $0x30] sm:$0xff] }
  0x84   :  { %v417_v25 = vld [vmem:[#allocation7 + $0x38] sm:$0xff]  ;;  %v572_v26 = vld [vmem:[#allocation9] sm:$0xff]  ;;  %v573_v27 = vld [vmem:[#allocation9 + $0x8] sm:$0xff] }
  0x85   :  { %v574_v28 = vld [vmem:[#allocation9 + $0x10] sm:$0xff]  ;;  %v575_v29 = vld [vmem:[#allocation9 + $0x18] sm:$0xff]  ;;  %v668_v30 = vld [vmem:[#allocation12] sm:$0xff] }
  0x86   :  { %254 = vperm.xlu0 %846, %v244_v10   ;;  %v850_v31 = vld [vmem:[%s1249_s3] sm:$0xff]   ;;  %v851_v50 = vld [vmem:[%s1249_s3 + $0x8] sm:$0xff]   ;;  %v852_v51 = vld [vmem:[%s1249_s3 + $0x10] sm:$0xff]  }
  0x87   :  { %259 = vperm.xlu1 %847, %v245_v11   ;;  %787 = vmatprep.mubr.msk.bf16.mxu1 %vm312_vm2, %v850_v31  ;;  %v853_v52 = vld [vmem:[%s1249_s3 + $0x18] sm:$0xff]   ;;  %v854_v53 = vld [vmem:[%s1251_s5] sm:$0xff]  }
  0x88   :  { %803 = vmatprep.mubr.msk.bf16.mxu0 %vm478_vm3, %v854_v53 }
  0x8a   :  { %264 = vperm.xlu0 %846, %v246_v12  }
  0x8b   :  { %269 = vperm.xlu1 %847, %v247_v13  }
  0x8e   :  { %274 = vperm.xlu0 %846, %v248_v14  }
  0x8f   :  { %279 = vperm.xlu1 %847, %v249_v15  }
  0x92   :  { %284 = vperm.xlu0 %846, %v250_v16  }
  0x93   :  { %289 = vperm.xlu1 %847, %v251_v17  }
  0x96   :  { %420 = vperm.xlu0 %846, %v410_v18  }
  0x97   :  { %425 = vperm.xlu1 %847, %v411_v19  }
  0x9a   :  { %430 = vperm.xlu0 %846, %v412_v20  }
  0x9b   :  { %435 = vperm.xlu1 %847, %v413_v21  }
  0x9e   :  { %440 = vperm.xlu0 %846, %v414_v22  }
  0x9f   :  { %445 = vperm.xlu1 %847, %v415_v23  }
  0xa2   :  { %450 = vperm.xlu0 %846, %v416_v24  }
  0xa3   :  { %455 = vperm.xlu1 %847, %v417_v25  }
  0xa6   :  { %578 = vperm.xlu0 %846, %v572_v26   ;;  %v855_v26 = vld [vmem:[%s1251_s5 + $0x8] sm:$0xff]  }
  0xa7   :  { %583 = vperm.xlu1 %847, %v573_v27   ;;  %v856_v27 = vld [vmem:[%s1251_s5 + $0x10] sm:$0xff]  }
  0xaa   :  { %588 = vperm.xlu0 %846, %v574_v28   ;;  %v857_v28 = vld [vmem:[%s1251_s5 + $0x18] sm:$0xff]  }
  0xab   :  { %593 = vperm.xlu1 %847, %v575_v29   ;;  %v858_v29 = vld [vmem:[%s1253_s7] sm:$0xff]  }
  0xae   :  { %671 = vperm.xlu0 %846, %v668_v30  }
  0xfd   :  { %v143_v33 = vpop.permute.xlu0 %142 }
  0xfe   :  { %v153_v32 = vpop.permute.xlu1 %152 }
 0x101   :  { %v148_v40 = vpop.permute.xlu0 %147 }
 0x102   :  { %v158_v37 = vpop.permute.xlu1 %157 }
 0x105   :  { %v255_v54 = vpop.permute.xlu0 %254 }
 0x106   :  { %v260_v55 = vpop.permute.xlu1 %259 }
 0x109   :  { %v265_v56 = vpop.permute.xlu0 %264 }
 0x10a   :  { %v270_v57 = vpop.permute.xlu1 %269 }
 0x10d   :  { %v275_v61 = vpop.permute.xlu0 %274 }
 0x10e   :  { %v280_v2 = vpop.permute.xlu1 %279 }
 0x111   :  { %v285_v9 = vpop.permute.xlu0 %284 }
 0x112   :  { %v290_v14 = vpop.permute.xlu1 %289 }
 0x115   :  { %v421_v30 = vpop.permute.xlu0 %420 }
 0x116   :  { %v426_v31 = vpop.permute.xlu1 %425 }
 0x156   :  { %v781_v34 = vpop.f32.mrb[0].mxu0 }
 0x157   :  { %v224_v35 = vadd.f32 %v781_v34, %v153_v32  ;;  %v215_v36 = vpop.f32.mrb[1].mxu0  ;;  %v431_v32 = vpop.permute.xlu0 %430 }
 0x158   :  { %v216_v38 = vadd.f32 %v215_v36, %v143_v33  ;;  %v782_v39 = vpop.f32.mrb[2].mxu0  ;;  %v436_v33 = vpop.permute.xlu1 %435 }
 0x159   :  { %v227_v41 = vadd.f32 %v782_v39, %v158_v37  ;;  %v218_v42 = vpop.f32.mrb[3].mxu0  ;;  %v232_v44 = vmax.f32 %v224_v35, 0.0 }
 0x15a   :  { %v219_v43 = vadd.f32 %v218_v42, %v148_v40  ;;  %v230_v46 = vmax.f32 %v216_v38, 0.0 }
 0x15b   :  { %v233_v45 = vmax.f32 %v227_v41, 0.0  ;;  %v441_v37 = vpop.permute.xlu0 %440 }
 0x15c   :  { %v231_v47 = vmax.f32 %v219_v43, 0.0  ;;  %v446_v42 = vpop.permute.xlu1 %445 }
 0x15d   :  { %v243_v48 = vpack.c.bf16 %v233_v45, %v232_v44 }
 0x15e   :  { %v242_v49 = vpack.c.bf16 %v231_v47, %v230_v46 }
 0x160   :  { %783 = vmatprep.subr.bf16.mxu1 %v242_v49 }
 0x161   :  { %784 = vmatpush3.bf16.msra.mxu1 %v242_v49  ;;  %v451_v49 = vpop.permute.xlu0 %450 }
 0x162   :  { %785 = vmatprep.subr.bf16.mxu1 %v243_v48 }
 0x165   :  { %786 = vmatpush3.bf16.msra.mxu1 %v243_v48 }
 0x168   :  { %788 = vmatmul.mubr.msk.bf16.vlgmr.msra.gmra.mrb[0].mxu1 %vm312_vm2, %v851_v50 }
 0x169   :  { %791 = vmatprep.mubr.msk.bf16.mxu1 %vm312_vm2, %v852_v51 }
 0x170   :  { %792 = vmatmul.mubr.msk.bf16.gmra.mrb[4].mxu1 %vm312_vm2, %v853_v52 }
 0x171   :  { %819 = vmatprep.mubr.msk.bf16.mxu1 %vm478_vm3, %v858_v29 }
 0x23b   :  { %v789_v58 = vpop.f32.mrb[0].mxu1 }
 0x23c   :  { %v368_v59 = vadd.f32 %v789_v58, %v265_v56  ;;  %v359_v60 = vpop.f32.mrb[1].mxu1 }
 0x23d   :  { %v360_v62 = vadd.f32 %v359_v60, %v255_v54  ;;  %v790_v63 = vpop.f32.mrb[2].mxu1  ;;  %v456_v54 = vpop.permute.xlu1 %455 }
 0x23e   :  { %v371_v0 = vadd.f32 %v790_v63, %v270_v57  ;;  %v362_v1 = vpop.f32.mrb[3].mxu1  ;;  %v392_v4 = vmax.f32 %v368_v59, 0.0 }
 0x23f   :  { %v363_v3 = vadd.f32 %v362_v1, %v260_v55  ;;  %v390_v6 = vmax.f32 %v360_v62, 0.0 }
 0x240   :  { %v393_v5 = vmax.f32 %v371_v0, 0.0 }
 0x241   :  { %v391_v7 = vmax.f32 %v363_v3, 0.0  ;;  %v1034_v3 = vmov 0.0  }
 0x242   :  { %v407_v8 = vpack.c.bf16 %v393_v5, %v392_v4  ;;  %v579_v4 = vpop.permute.xlu0 %578  ;;  %v584_v5 = vpop.permute.xlu1 %583 }
 0x243   :  { %v406_v10 = vpack.c.bf16 %v391_v7, %v390_v6  ;;  %v793_v11 = vpop.f32.mrb[4].mxu1 }
 0x244   :  { %v384_v12 = vadd.f32 %v793_v11, %v285_v9  ;;  %v375_v13 = vpop.f32.mrb[5].mxu1 }
 0x245   :  { %v376_v15 = vadd.f32 %v375_v13, %v275_v61  ;;  %v794_v16 = vpop.f32.mrb[6].mxu1  ;;  %795 = vmatprep.subr.bf16.mxu0 %v406_v10 }
 0x246   :  { %v387_v17 = vadd.f32 %v794_v16, %v290_v14  ;;  %v378_v18 = vpop.f32.mrb[7].mxu1  ;;  %796 = vmatpush3.bf16.msra.mxu0 %v406_v10  ;;  %v396_v20 = vmax.f32 %v384_v12, 0.0  ;;  %v589_v6 = vpop.permute.xlu0 %588 }
 0x247   :  { %v379_v19 = vadd.f32 %v378_v18, %v280_v2  ;;  %797 = vmatprep.subr.bf16.mxu0 %v407_v8  ;;  %v394_v22 = vmax.f32 %v376_v15, 0.0  ;;  %v859_v2 = vld [vmem:[%s1253_s7 + $0x8] sm:$0xff]   ;;  %v594_v10 = vpop.permute.xlu1 %593 }
 0x248   :  { %v397_v21 = vmax.f32 %v387_v17, 0.0 }
 0x249   :  { %v395_v23 = vmax.f32 %v379_v19, 0.0 }
 0x24a   :  { %v409_v24 = vpack.c.bf16 %v397_v21, %v396_v20  ;;  %798 = vmatpush3.bf16.msra.mxu0 %v407_v8 }
 0x24b   :  { %v408_v25 = vpack.c.bf16 %v395_v23, %v394_v22  ;;  %v665_v22 = vld [vmem:[#allocation10] sm:$0xf]  ;;  %v672_v23 = vpop.permute.xlu0 %671 }
 0x24d   :  { %799 = vmatprep.subr.bf16.mxu0 %v408_v25 }
 0x24e   :  { %800 = vmatpush3.bf16.msra.mxu0 %v408_v25 }
 0x24f   :  { %801 = vmatprep.subr.bf16.mxu0 %v409_v24 }
 0x252   :  { %802 = vmatpush3.bf16.msra.mxu0 %v409_v24 }
 0x255   :  { %804 = vmatmul.mubr.msk.bf16.vlgmr.msra.gmra.mrb[4].mxu0 %vm478_vm3, %v855_v26 }
 0x256   :  { %807 = vmatprep.mubr.msk.bf16.mxu0 %vm478_vm3, %v856_v27 }
 0x25d   :  { %808 = vmatmul.mubr.msk.bf16.gmra.mrb[8].mxu0 %vm478_vm3, %v857_v28 }
 0x328   :  { %v805_v34 = vpop.f32.mrb[4].mxu0 }
 0x329   :  { %v534_v35 = vadd.f32 %v805_v34, %v431_v32  ;;  %v525_v36 = vpop.f32.mrb[5].mxu0 }
 0x32a   :  { %v526_v38 = vadd.f32 %v525_v36, %v421_v30  ;;  %v806_v39 = vpop.f32.mrb[6].mxu0 }
 0x32b   :  { %v537_v40 = vadd.f32 %v806_v39, %v436_v33  ;;  %v528_v41 = vpop.f32.mrb[7].mxu0  ;;  %v558_v44 = vmax.f32 %v534_v35, 0.0 }
 0x32c   :  { %v529_v43 = vadd.f32 %v528_v41, %v426_v31  ;;  %v556_v46 = vmax.f32 %v526_v38, 0.0 }
 0x32d   :  { %v559_v45 = vmax.f32 %v537_v40, 0.0 }
 0x32e   :  { %v557_v47 = vmax.f32 %v529_v43, 0.0 }
 0x32f   :  { %v569_v48 = vpack.c.bf16 %v559_v45, %v558_v44 }
 0x330   :  { %v568_v50 = vpack.c.bf16 %v557_v47, %v556_v46  ;;  %v809_v51 = vpop.f32.mrb[8].mxu0 }
 0x331   :  { %v550_v52 = vadd.f32 %v809_v51, %v451_v49  ;;  %v541_v53 = vpop.f32.mrb[9].mxu0 }
 0x332   :  { %v542_v55 = vadd.f32 %v541_v53, %v441_v37  ;;  %v810_v56 = vpop.f32.mrb[10].mxu0  ;;  %811 = vmatprep.subr.bf16.mxu1 %v568_v50 }
 0x333   :  { %v553_v57 = vadd.f32 %v810_v56, %v456_v54  ;;  %v544_v58 = vpop.f32.mrb[11].mxu0  ;;  %812 = vmatpush3.bf16.msra.mxu1 %v568_v50  ;;  %v562_v60 = vmax.f32 %v550_v52, 0.0 }
 0x334   :  { %v545_v59 = vadd.f32 %v544_v58, %v446_v42  ;;  %813 = vmatprep.subr.bf16.mxu1 %v569_v48  ;;  %v560_v62 = vmax.f32 %v542_v55, 0.0 }
 0x335   :  { %v563_v61 = vmax.f32 %v553_v57, 0.0 }
 0x336   :  { %v561_v63 = vmax.f32 %v545_v59, 0.0 }
 0x337   :  { %v571_v0 = vpack.c.bf16 %v563_v61, %v562_v60  ;;  %814 = vmatpush3.bf16.msra.mxu1 %v569_v48 }
 0x338   :  { %v570_v1 = vpack.c.bf16 %v561_v63, %v560_v62 }
 0x33a   :  { %815 = vmatprep.subr.bf16.mxu1 %v570_v1 }
 0x33b   :  { %816 = vmatpush3.bf16.msra.mxu1 %v570_v1 }
 0x33c   :  { %817 = vmatprep.subr.bf16.mxu1 %v571_v0 }
 0x33f   :  { %818 = vmatpush3.bf16.msra.mxu1 %v571_v0 }
 0x340   :  { %823 = vmatprep.subr.bf16.mxu1 %v1034_v3 }
 0x342   :  { %820 = vmatmul.mubr.msk.bf16.vlgmr.msra.gmra.mrb[8].mxu1 %vm478_vm3, %v859_v2 }
 0x343   :  { %827 = vmatprep.mubr.msk.bf16.mxu1 %vm1035_vm4, %v1034_v3 }
 0x415   :  { %v821_v7 = vpop.f32.mrb[8].mxu1 }
 0x416   :  { %v655_v8 = vadd.f32 %v821_v7, %v589_v6  ;;  %v646_v9 = vpop.f32.mrb[9].mxu1 }
 0x417   :  { %v647_v11 = vadd.f32 %v646_v9, %v579_v4  ;;  %v822_v12 = vpop.f32.mrb[10].mxu1 }
 0x418   :  { %v658_v13 = vadd.f32 %v822_v12, %v594_v10  ;;  %v649_v14 = vpop.f32.mrb[11].mxu1  ;;  %v663_v16 = vmax.f32 %v655_v8, 0.0 }
 0x419   :  { %v650_v15 = vadd.f32 %v649_v14, %v584_v5  ;;  %v661_v18 = vmax.f32 %v647_v11, 0.0 }
 0x41a   :  { %v664_v17 = vmax.f32 %v658_v13, 0.0 }
 0x41b   :  { %v662_v19 = vmax.f32 %v650_v15, 0.0 }
 0x41c   :  { %v667_v20 = vpack.c.bf16 %v664_v17, %v663_v16 }
 0x41d   :  { %v666_v21 = vpack.c.bf16 %v662_v19, %v661_v18 }
 0x41f   :  { %824 = vmatpush3.bf16.msra.mxu1 %v666_v21 }
 0x420   :  { %825 = vmatprep.subr.bf16.mxu1 %v1034_v3 }
 0x423   :  { %826 = vmatpush3.bf16.msra.mxu1 %v667_v20 }
 0x426   :  { %828 = vmatmul.mubr.msk.bf16.vlgmr.msra.gmra.mrb[12].mxu1 %vm312_vm2, %v665_v22 }
 0x4f9   :  { %v711_v24 = vpop.f32.mrb[12].mxu1 }
 0x4fa   :  { %v712_v25 = vadd.f32 %v711_v24, %v672_v23  ;;  %v829_v26 = vpop.f32.mrb[13].mxu1 }
 0x4fb   :  { %v714_v27 = vpop.f32.mrb[14].mxu1 }
 0x4fc   :  { %717 = vst [vmem:[%s1257_s11] sm:$0xff] %v712_v25  ;;  %v830_v28 = vpop.f32.mrb[15].mxu1 }
 0x4fd   :  { %722 = vsyncpa [#allocation3], 1 }
 0x4fe   :  { %723 = vsyncpa [#allocation5], 1 }
 0x4ff   :  { %724 = vsyncpa [#allocation8], 1 }
 0x500   :  { %725 = vsyncpa [#allocation11], 1 }

</bundles_post_ra>
